<compile_context>
chip_gen: v5e
topology: v5e:2x2
jax: 0.10.0
libtpu: 0.0.40
codegen_flags: <defaults>
</compile_context>

<pallas_src>
import jax
import jax.numpy as jnp
from jax.experimental import pallas as pl
from jax.experimental.pallas import tpu as pltpu


# ---------------------------------------------------------------- tiling ----
def _round_down_to_8(n: int) -> int:
    return max(8, (n // 8) * 8)


def _pick_tm(m: int, target: int) -> int:
    """Row-tile size: as large as possible, 8-aligned when not covering the
    full array, and split so the parallel grid has >= 2 steps whenever there
    is enough work (v7x has 2 TensorCores)."""
    tm = min(target, m)
    if tm < m:
        return _round_down_to_8(tm)
    if m >= 16:
        return _round_down_to_8(pl.cdiv(m, 2))
    return tm


def _full_block_spec(arr):
    """Grid-invariant operand: full-array block, same block index every step
    (stays VMEM-resident, DMA'd once)."""
    zeros = (0,) * arr.ndim
    return pl.BlockSpec(arr.shape, lambda i, _z=zeros: _z)


# --------------------------------------------- generic residual add path ----
def _add_kernel(y_ref, x_ref, o_ref):
    o_ref[...] = y_ref[...] + x_ref[...]


def residual_add(y, x, *, tm_target=4096):
    """out = y + x  (y = fn(x) computed by arbitrary JAX code outside)."""
    assert y.shape == x.shape and y.dtype == x.dtype
    d = x.shape[-1]
    m = x.size // d
    y2 = y.reshape(m, d)
    x2 = x.reshape(m, d)
    tm = _pick_tm(m, tm_target)
    nbytes = 3 * int(x.size) * x.dtype.itemsize
    out = pl.pallas_call(
        _add_kernel,
        out_shape=jax.ShapeDtypeStruct((m, d), x.dtype),
        grid_spec=pltpu.PrefetchScalarGridSpec(
            num_scalar_prefetch=0,
            grid=(pl.cdiv(m, tm),),
            in_specs=[
                pl.BlockSpec((tm, d), lambda i: (i, 0)),
                pl.BlockSpec((tm, d), lambda i: (i, 0)),
            ],
            out_specs=pl.BlockSpec((tm, d), lambda i: (i, 0)),
        ),
        compiler_params=pltpu.CompilerParams(
            dimension_semantics=("parallel",)
        ),
        cost_estimate=pl.CostEstimate(
            flops=int(x.size), transcendentals=0, bytes_accessed=nbytes
        ),
    )(y2, x2)
    return out.reshape(x.shape)


# ---------------------------------------------------- fused residual path ----
def residual_fused(fn, x, params=(), *, tm_target=2048, cost_estimate=None):
    """out = fn(x, *params) + x with `fn` traced inside the Pallas kernel.

    `fn` must be row-local: it maps a (rows, D) tile to a (rows, D) tile with
    no coupling across rows (true for PreNorm / FeedForward style blocks).
    `params` (the module's weights, i.e. the "**kwargs"/state of fn) are small
    arrays kept fully VMEM-resident via grid-invariant full-array blocks.
    """
    d = x.shape[-1]
    m = x.size // d
    x2 = x.reshape(m, d)
    tm = _pick_tm(m, tm_target)
    n_params = len(params)

    def kernel(*refs):
        x_ref = refs[0]
        p_refs = refs[1:1 + n_params]
        o_ref = refs[1 + n_params]
        xt = x_ref[...]
        y = fn(xt, *(p[...] for p in p_refs))
        o_ref[...] = (y.astype(jnp.float32)
                      + xt.astype(jnp.float32)).astype(o_ref.dtype)

    in_specs = [pl.BlockSpec((tm, d), lambda i: (i, 0))]
    in_specs += [_full_block_spec(p) for p in params]

    out = pl.pallas_call(
        kernel,
        out_shape=jax.ShapeDtypeStruct((m, d), x.dtype),
        grid_spec=pltpu.PrefetchScalarGridSpec(
            num_scalar_prefetch=0,
            grid=(pl.cdiv(m, tm),),
            in_specs=in_specs,
            out_specs=pl.BlockSpec((tm, d), lambda i: (i, 0)),
        ),
        compiler_params=pltpu.CompilerParams(
            dimension_semantics=("parallel",)
        ),
        cost_estimate=cost_estimate,
    )(x2, *params)
    return out.reshape(x.shape)


# ----------------------------------------------- demo wrapped fn (Panformer) ----
def prenorm_ffn(x_tile, gamma, beta, w1, b1, w2, b2):
    """Typical Panformer wrapped fn: LayerNorm (PreNorm) -> Linear -> GELU ->
    Linear, all acting on the last dim.  Matmuls run in bf16 on the MXU with
    f32 accumulation; bias adds stay in f32."""
    xf = x_tile.astype(jnp.float32)
    mu = jnp.mean(xf, axis=-1, keepdims=True)
    var = jnp.mean(jnp.square(xf - mu), axis=-1, keepdims=True)
    xn = (xf - mu) * jax.lax.rsqrt(var + 1e-5) * gamma + beta
    h = jnp.dot(xn.astype(w1.dtype), w1, preferred_element_type=jnp.float32) + b1
    h = jax.nn.gelu(h)
    y = jnp.dot(h.astype(w2.dtype), w2, preferred_element_type=jnp.float32) + b2
    return y


# ---------------------------------------------------------------- demo ----
if __name__ == "__main__":
    key = jax.random.PRNGKey(0)
    batch, seq, dim, hidden = 2, 8, 128, 256   # last dim lane-dense (128-mult)
    ks = jax.random.split(key, 5)
    x = jax.random.normal(ks[0], (batch, seq, dim), dtype=jnp.float32)
    gamma = jnp.ones((1, dim), jnp.float32)
    beta = jnp.zeros((1, dim), jnp.float32)
    w1 = (jax.random.normal(ks[1], (dim, hidden), jnp.float32)
          / jnp.sqrt(dim)).astype(jnp.bfloat16)
    b1 = 0.1 * jax.random.normal(ks[2], (1, hidden), jnp.float32)
    w2 = (jax.random.normal(ks[3], (hidden, dim), jnp.float32)
          / jnp.sqrt(hidden)).astype(jnp.bfloat16)
    b2 = 0.1 * jax.random.normal(ks[4], (1, dim), jnp.float32)
    params = (gamma, beta, w1, b1, w2, b2)

    m = batch * seq
    ce = pl.CostEstimate(
        flops=4 * m * dim * hidden + 12 * m * dim,
        transcendentals=m * hidden + m,
        bytes_accessed=(2 * int(x.size) * 4
                        + sum(int(p.size) * p.dtype.itemsize for p in params)),
    )

    # Fused path: fn traced inside the kernel -> single HBM round trip.
    fused = jax.jit(
        lambda xx, pp: residual_fused(prenorm_ffn, xx, pp, cost_estimate=ce)
    )
    out_fused = jax.block_until_ready(fused(x, params))

    # Generic path: fn(x) computed as plain JAX, residual add in Pallas.
    # TODO(synk): non-token-local wrapped modules (e.g. window attention)
    # cannot be fused generically into the kernel; they take this path.
    y = prenorm_ffn(x.reshape(m, dim), *params).reshape(x.shape).astype(x.dtype)
    out_add = jax.block_until_ready(jax.jit(residual_add)(y, x))

    # Pure-JAX reference of the module semantics: fn(x) + x.
    ref = (prenorm_ffn(x.reshape(m, dim), *params).reshape(x.shape)
           + x).astype(x.dtype)

    assert out_fused.shape == x.shape and out_add.shape == x.shape
    assert jnp.allclose(out_fused, ref, atol=5e-3, rtol=5e-3), \
        float(jnp.max(jnp.abs(out_fused - ref)))
    assert jnp.allclose(out_add, ref, atol=5e-3, rtol=5e-3), \
        float(jnp.max(jnp.abs(out_add - ref)))
    print("KERNEL_OK")
</pallas_src>

<mosaic_0001>
module attributes {stable_mosaic.version = 11 : i64} {
  func.func @kernel(%arg0: i32, %arg1: memref<8x128xf32, #tpu.memory_space<vmem>>, %arg2: memref<1x128xf32, #tpu.memory_space<vmem>>, %arg3: memref<1x128xf32, #tpu.memory_space<vmem>>, %arg4: memref<128x256xbf16, #tpu.memory_space<vmem>>, %arg5: memref<1x256xf32, #tpu.memory_space<vmem>>, %arg6: memref<256x128xbf16, #tpu.memory_space<vmem>>, %arg7: memref<1x128xf32, #tpu.memory_space<vmem>>, %arg8: memref<8x128xf32, #tpu.memory_space<vmem>>) attributes {dimension_semantics = [#tpu.dimension_semantics<parallel>], iteration_bounds = array<i64: 2>, scalar_prefetch = 0 : i64, scratch_operands = 0 : i64, tpu.core_type = #tpu.core_type<tc>, window_params = [{transform_indices = @transform_0, window_bounds = array<i64: 8, 128>}, {pipeline_mode = #tpu.pipeline_mode<synchronous>, transform_indices = @transform_1, window_bounds = array<i64: 1, 128>}, {pipeline_mode = #tpu.pipeline_mode<synchronous>, transform_indices = @transform_2, window_bounds = array<i64: 1, 128>}, {pipeline_mode = #tpu.pipeline_mode<synchronous>, transform_indices = @transform_3, window_bounds = array<i64: 128, 256>}, {pipeline_mode = #tpu.pipeline_mode<synchronous>, transform_indices = @transform_4, window_bounds = array<i64: 1, 256>}, {pipeline_mode = #tpu.pipeline_mode<synchronous>, transform_indices = @transform_5, window_bounds = array<i64: 256, 128>}, {pipeline_mode = #tpu.pipeline_mode<synchronous>, transform_indices = @transform_6, window_bounds = array<i64: 1, 128>}, {transform_indices = @transform_7, window_bounds = array<i64: 8, 128>}]} {
    %c0 = arith.constant 0 : index
    %c0_0 = arith.constant 0 : index
    %0 = vector.load %arg1[%c0, %c0_0] : memref<8x128xf32, #tpu.memory_space<vmem>>, vector<8x128xf32>
    %c0_1 = arith.constant 0 : index
    %c0_2 = arith.constant 0 : index
    %1 = vector.load %arg2[%c0_1, %c0_2] : memref<1x128xf32, #tpu.memory_space<vmem>>, vector<1x128xf32>
    %c0_3 = arith.constant 0 : index
    %c0_4 = arith.constant 0 : index
    %2 = vector.load %arg3[%c0_3, %c0_4] : memref<1x128xf32, #tpu.memory_space<vmem>>, vector<1x128xf32>
    %c0_5 = arith.constant 0 : index
    %c0_6 = arith.constant 0 : index
    %3 = vector.load %arg4[%c0_5, %c0_6] : memref<128x256xbf16, #tpu.memory_space<vmem>>, vector<128x256xbf16>
    %c0_7 = arith.constant 0 : index
    %c0_8 = arith.constant 0 : index
    %4 = vector.load %arg5[%c0_7, %c0_8] : memref<1x256xf32, #tpu.memory_space<vmem>>, vector<1x256xf32>
    %c0_9 = arith.constant 0 : index
    %c0_10 = arith.constant 0 : index
    %5 = vector.load %arg6[%c0_9, %c0_10] : memref<256x128xbf16, #tpu.memory_space<vmem>>, vector<256x128xbf16>
    %c0_11 = arith.constant 0 : index
    %c0_12 = arith.constant 0 : index
    %6 = vector.load %arg7[%c0_11, %c0_12] : memref<1x128xf32, #tpu.memory_space<vmem>>, vector<1x128xf32>
    %cst = arith.constant dense<0.000000e+00> : vector<8xf32>
    %7 = vector.multi_reduction <add>, %0, %cst [1] : vector<8x128xf32> to vector<8xf32>
    %8 = vector.shape_cast %7 : vector<8xf32> to vector<8x1xf32>
    %cst_13 = arith.constant 1.280000e+02 : f32
    %9 = vector.broadcast %cst_13 : f32 to vector<8x1xf32>
    %10 = arith.divf %8, %9 : vector<8x1xf32>
    %11 = vector.broadcast %10 : vector<8x1xf32> to vector<8x128xf32>
    %12 = arith.subf %0, %11 : vector<8x128xf32>
    %13 = arith.mulf %12, %12 : vector<8x128xf32>
    %cst_14 = arith.constant dense<0.000000e+00> : vector<8xf32>
    %14 = vector.multi_reduction <add>, %13, %cst_14 [1] : vector<8x128xf32> to vector<8xf32>
    %15 = vector.shape_cast %14 : vector<8xf32> to vector<8x1xf32>
    %cst_15 = arith.constant 1.280000e+02 : f32
    %16 = vector.broadcast %cst_15 : f32 to vector<8x1xf32>
    %17 = arith.divf %15, %16 : vector<8x1xf32>
    %18 = vector.broadcast %10 : vector<8x1xf32> to vector<8x128xf32>
    %19 = arith.subf %0, %18 : vector<8x128xf32>
    %cst_16 = arith.constant 9.99999974E-6 : f32
    %20 = vector.broadcast %cst_16 : f32 to vector<8x1xf32>
    %21 = arith.addf %17, %20 : vector<8x1xf32>
    %22 = math.rsqrt %21 : vector<8x1xf32>
    %23 = vector.broadcast %22 : vector<8x1xf32> to vector<8x128xf32>
    %24 = arith.mulf %19, %23 : vector<8x128xf32>
    %25 = vector.broadcast %1 : vector<1x128xf32> to vector<8x128xf32>
    %26 = arith.mulf %24, %25 : vector<8x128xf32>
    %27 = vector.broadcast %2 : vector<1x128xf32> to vector<8x128xf32>
    %28 = arith.addf %26, %27 : vector<8x128xf32>
    %29 = arith.truncf %28 : vector<8x128xf32> to vector<8x128xbf16>
    %cst_17 = arith.constant dense<0.000000e+00> : vector<8x256xf32>
    %30 = tpu.matmul %29, %3, %cst_17 {dimension_numbers = #tpu.dot_dimension_numbers<[1], [0], [0], [1], [0, 0, 1, 1], [], []>} : vector<8x128xbf16>, vector<128x256xbf16>, vector<8x256xf32> -> vector<8x256xf32>
    %31 = vector.broadcast %4 : vector<1x256xf32> to vector<8x256xf32>
    %32 = arith.addf %30, %31 : vector<8x256xf32>
    %33 = arith.mulf %32, %32 : vector<8x256xf32>
    %34 = arith.mulf %32, %33 : vector<8x256xf32>
    %cst_18 = arith.constant 4.471500e-02 : f32
    %35 = vector.broadcast %cst_18 : f32 to vector<8x256xf32>
    %36 = arith.mulf %35, %34 : vector<8x256xf32>
    %37 = arith.addf %32, %36 : vector<8x256xf32>
    %cst_19 = arith.constant 0.797884583 : f32
    %38 = vector.broadcast %cst_19 : f32 to vector<8x256xf32>
    %39 = arith.mulf %38, %37 : vector<8x256xf32>
    %40 = math.tanh %39 : vector<8x256xf32>
    %cst_20 = arith.constant 1.000000e+00 : f32
    %41 = vector.broadcast %cst_20 : f32 to vector<8x256xf32>
    %42 = arith.addf %41, %40 : vector<8x256xf32>
    %cst_21 = arith.constant 5.000000e-01 : f32
    %43 = vector.broadcast %cst_21 : f32 to vector<8x256xf32>
    %44 = arith.mulf %43, %42 : vector<8x256xf32>
    %45 = arith.mulf %32, %44 : vector<8x256xf32>
    %46 = arith.truncf %45 : vector<8x256xf32> to vector<8x256xbf16>
    %cst_22 = arith.constant dense<0.000000e+00> : vector<8x128xf32>
    %47 = tpu.matmul %46, %5, %cst_22 {dimension_numbers = #tpu.dot_dimension_numbers<[1], [0], [0], [1], [0, 0, 1, 1], [], []>} : vector<8x256xbf16>, vector<256x128xbf16>, vector<8x128xf32> -> vector<8x128xf32>
    %48 = vector.broadcast %6 : vector<1x128xf32> to vector<8x128xf32>
    %49 = arith.addf %47, %48 : vector<8x128xf32>
    %50 = arith.addf %49, %0 : vector<8x128xf32>
    %c0_23 = arith.constant 0 : index
    %c0_24 = arith.constant 0 : index
    %51 = vector.load %arg8[%c0_23, %c0_24] : memref<8x128xf32, #tpu.memory_space<vmem>>, vector<8x128xf32>
    tpu.vector_store %arg8[%c0_23, %c0_24], %50 {strides = array<i32>} : memref<8x128xf32, #tpu.memory_space<vmem>>, vector<8x128xf32>,
    return
  }
  func.func @transform_0(%arg0: i32) -> (i32, i32) {
    %c0_i32 = arith.constant 0 : i32
    %c0_i32_0 = arith.constant 0 : i32
    return %arg0, %c0_i32 : i32, i32
  }
  func.func @transform_1(%arg0: i32) -> (i32, i32) {
    %c0_i32 = arith.constant 0 : i32
    %c0_i32_0 = arith.constant 0 : i32
    %c0_i32_1 = arith.constant 0 : i32
    return %c0_i32, %c0_i32_0 : i32, i32
  }
  func.func @transform_2(%arg0: i32) -> (i32, i32) {
    %c0_i32 = arith.constant 0 : i32
    %c0_i32_0 = arith.constant 0 : i32
    %c0_i32_1 = arith.constant 0 : i32
    return %c0_i32, %c0_i32_0 : i32, i32
  }
  func.func @transform_3(%arg0: i32) -> (i32, i32) {
    %c0_i32 = arith.constant 0 : i32
    %c0_i32_0 = arith.constant 0 : i32
    %c0_i32_1 = arith.constant 0 : i32
    return %c0_i32, %c0_i32_0 : i32, i32
  }
  func.func @transform_4(%arg0: i32) -> (i32, i32) {
    %c0_i32 = arith.constant 0 : i32
    %c0_i32_0 = arith.constant 0 : i32
    %c0_i32_1 = arith.constant 0 : i32
    return %c0_i32, %c0_i32_0 : i32, i32
  }
  func.func @transform_5(%arg0: i32) -> (i32, i32) {
    %c0_i32 = arith.constant 0 : i32
    %c0_i32_0 = arith.constant 0 : i32
    %c0_i32_1 = arith.constant 0 : i32
    return %c0_i32, %c0_i32_0 : i32, i32
  }
  func.func @transform_6(%arg0: i32) -> (i32, i32) {
    %c0_i32 = arith.constant 0 : i32
    %c0_i32_0 = arith.constant 0 : i32
    %c0_i32_1 = arith.constant 0 : i32
    return %c0_i32, %c0_i32_0 : i32, i32
  }
  func.func @transform_7(%arg0: i32) -> (i32, i32) {
    %c0_i32 = arith.constant 0 : i32
    %c0_i32_0 = arith.constant 0 : i32
    return %arg0, %c0_i32 : i32, i32
  }
}

</mosaic_0001>

<bundles_post_ra>
// kernel: _lambda_.1
= control target key start
LH: loop header
LB: loop body
LE: loop exit
PB: predicated region body
PF: predicated region fallthrough
CT: control target
= control target key end

     0   :  { %s1506_s0 = inlined_call_operand.hbm [shape: f32[16,128], index: 0, kind: input, shape index: {}]   ;;  %s1507_s1 = inlined_call_operand.vmem [shape: f32[1,128], index: 1, kind: input, shape index: {}]   ;;  %s1508_s2 = inlined_call_operand.hbm [shape: f32[1,128], index: 2, kind: input, shape index: {}]   ;;  %s1509_s3 = inlined_call_operand.hbm [shape: bf16[128,256], index: 3, kind: input, shape index: {}]   ;;  %s1510_s4 = inlined_call_operand.vmem [shape: f32[1,256], index: 4, kind: input, shape index: {}]   ;;  %s1511_s5 = inlined_call_operand.hbm [shape: bf16[256,128], index: 5, kind: input, shape index: {}]   ;;  %s1512_s6 = inlined_call_operand.vmem [shape: f32[1,128], index: 6, kind: input, shape index: {}]   ;;  %s1513_s7 = inlined_call_operand.hbm [shape: f32[16,128], index: 7, kind: output, shape index: {}]  }
   0x1   :  { %1514 = sst [smem:[#allocation15_spill]] %s1508_s2 }
   0x2   :  { %12 = vsyncpa [#allocation3], 0 }
   0x3   :  { %14 = vsyncpa [#allocation3 + $0x1], 0 }
   0x4   :  { %15 = vsyncpa [#allocation6], 0 }
   0x5   :  { %16 = vsyncpa [#allocation9], 0 }
   0x6   :  { %17 = vsyncpa [#allocation4], 0 }
   0x7   :  { %19 = vsyncpa [#allocation4 + $0x1], 0  ;;  %s1321_s24 = smov 0   ;;  %s1323_s25 = smov 0  }
   0x8   :  { %s1325_s26 = smov 0   ;;  %s1327_s27 = smov 0  }
   0x9 LB: > { %s1342_s28 = sadd.s32 4294967295, %s1271_s27   ;;  %s806_s29 = sadd.s32 4294967294, %s1271_s27   ;;  %s1271_s27 = sphi %s1327_s27, %s1526_s27   ;;  %s1267_s26 = sphi %s1325_s26, %s1525_s26   ;;  %s1263_s25 = sphi %s1323_s25, %s1524_s25   ;;  %s1259_s24 = sphi %s1321_s24, %s1523_s24  }
   0xa   : > { %p45_p0 = scmp.ne.s32.totalorder %s1263_s25, %s1259_s24  ;;  %p46_p1 = scmp.eq.s32.totalorder %s1342_s28, 0 }
   0xb   : > { %p195_p2 = scmp.eq.s32.totalorder %s1342_s28, 1  ;;  %p201_p3 = scmp.eq.s32.totalorder %s806_s29, 1 }
   0xc   : > { %p1351_p4 = por %p46_p1, %p45_p0  ;;  %p807_p5 = scmp.ge.s32.totalorder %s1271_s27, 1 }
   0xd   : > { %p1356_p6 = por %p201_p3, %p45_p0  ;;  %p208_p7 = scmp.lt.s32.totalorder %s1271_s27, 3 }
   0xe   : > { %s1517_s2 = sld [smem:[#allocation15_spill]]  ;;  %s1273_s13 = smov [#allocation5]  }
   0xf   : > { %p1364_p8 = pnand %p807_p5, %p208_p7  ;;  %s225_s14 = sshll.u32 %s1273_s13, 4  ;;  %s226_s14 = int_to_ptr.vmem [resolvable:$true] %s225_s14 }
  0x10   : > { %s234_s17 = sshll.u32 %s1509_s3, 4  ;;  %s1274_s19 = smov [#allocation7]   ;;  %s235_s17 = int_to_ptr.hbm [resolvable:$true] %s234_s17 }
  0x11   : > { %p1000_p10 = pneg %p1364_p8  ;;  %s236_s20 = sshll.u32 %s1274_s19, 4  ;;  %s237_s20 = int_to_ptr.vmem [resolvable:$true] %s236_s20 }
  0x12   : > { %s1275_s21 = smov 128   ;;  %s1276_s22 = smov 8  }
  0x13   : > { %p1376_p11 = pnand %p1000_p10, %p46_p1  ;;  %s251_s9 = sshll.u32 %s1511_s5, 4  ;;  %s252_s9 = int_to_ptr.hbm [resolvable:$true] %s251_s9 }
  0x14   : > { %s223_s11 = sshll.u32 %s1517_s2, 4  ;;  %s1277_s10 = smov [#allocation8]   ;;  %s224_s11 = int_to_ptr.hbm [resolvable:$true] %s223_s11 }
  0x15   : > { %1003 = dma.hbm_to_vmem [thread:$0]  (!%p1376_p11), %s224_s11, 16, %s226_s14, [#allocation6]  }
  0x16   : > { %1006 = dma.hbm_to_vmem [thread:$0]  (!%p1376_p11), %s235_s17, 2048, %s237_s20, [#allocation6], %s1275_s21, %s1275_s21, %s1276_s22  }
  0x17   : > { %s253_s11 = sshll.u32 %s1277_s10, 4  ;;  %s1278_s13 = smov 64   ;;  %s254_s11 = int_to_ptr.vmem [resolvable:$true] %s253_s11 }
  0x18   : > { %s1279_s14 = smov 4   ;;  %s1390_s15 = sadd.s32 1, %s1271_s27  }
  0x19   : > { %1009 = dma.hbm_to_vmem [thread:$0]  (!%p1376_p11), %s252_s9, 2048, %s254_s11, [#allocation9], %s1278_s13, %s1278_s13, %s1279_s14  }
  0x1a   : > { %s29_s16 = ssub.s32 %s1271_s27, %s1390_s15  ;;  %s32_s17 = sadd.s32 1, %s1267_s26 }
  0x1b   : > { %p30_p12 = scmp.eq.s32.totalorder %s29_s16, 0  ;;  %p39_p13 = scmp.ne.s32.totalorder %s1267_s26, %s1263_s25 }
  0x1c   : > { %p40_p0 = scmp.eq.s32.totalorder %s1271_s27, 0  ;;  %p1021_p5 = scmp.lt.s32.totalorder %s1271_s27, 2 }
  0x1d   : > { %s1399_s19 = scalar_select %p30_p12, %s1267_s26, %s32_s17  }
  0x1e   : > { %p1403_p3 = por %p195_p2, %p39_p13  ;;  %s270_s21 = sand.u32 1, %s1267_s26  }
  0x1f   : > { %s813_s22 = sshll.u32 %s1271_s27, 3  ;;  %p41_p7 = por %p40_p0, %p39_p13 }
  0x20   : > { %s812_s18 = sshll.u32 %s270_s21, 3  ;;  %s278_s9 = scalar_lea.hbm %s1506_s0, %s813_s22 }
  0x21   : > { %s280_s10 = sshll.u32 %s278_s9, 4  ;;  %s274_s11 = scalar_lea.vmem [#allocation2], %s812_s18  ;;  %s281_s10 = int_to_ptr.hbm [resolvable:$true] %s280_s10 }
  0x22   : > { %s282_s13 = sshll.u32 %s274_s11, 4  ;;  %p1413_p10 = pnand %p1021_p5, %p41_p7  ;;  %s283_s13 = int_to_ptr.vmem [resolvable:$true] %s282_s13 }
  0x23   : > { %s271_s16 = scalar_lea.sflag [#allocation3], %s270_s21  ;;  %s1167_s17 = sshra.s32 %s281_s10, 4  ;;  %s1168_s17 = int_to_ptr.hbm [resolvable:$true] %s1167_s17 }
  0x24   : > { %s1169_s2 = scalar_lea.hbm %s1168_s17, 8  ;;  %p1171_p11 = pneg %p1413_p10 }
  0x25   : > { %p1170_p2 = scmp.ne.s32.totalorder %s1168_s17, %s1169_s2  ;;  %s1174_s18 = scalar_lea.hbm %s1506_s0, 16 }
  0x26   : > { %p1175_p0 = scmp.lt.s32.totalorder %s1168_s17, %s1506_s0  ;;  %p1176_p5 = scmp.lt.s32.totalorder %s1174_s18, %s1169_s2 }
  0x27   : > { %p1172_p12 = pnand %p1171_p11, %p1170_p2 }
  0x28   : > { %p1177_p7 = por %p1176_p5, %p1175_p0 }
  0x29   : > { %p1173_p13 = pneg %p1172_p12 }
  0x2b   : > { %p1178_p9 = pnand %p1177_p7, %p1173_p13 }
  0x2d   : > { %1181 = shalt.err (!%p1178_p9)
}
  0x2e   : > { %1013 = dma.hbm_to_vmem [thread:$0]  (!%p1413_p10), %s281_s10, 128, %s283_s13, %s271_s16  }
  0x2f   : > { %291 = sbr.rel (%p1364_p8) target bundleno = 621 (0x26d), region = 48  ;;  %s1430_s21 = sand.u32 (!%p1364_p8), 1, %s1263_s25  }
  0x30   : > { %s815_s11 = sshll.u32 (!%p1364_p8), %s1430_s21, 3  ;;  %s294_s22 = scalar_lea.sflag (!%p1364_p8), [#allocation3], %s1430_s21 }
  0x31   : > { %s297_s2 = scalar_lea.vmem (!%p1364_p8), [#allocation2], %s815_s11 }
  0x34   : > { %1242 = dma.done.wait (%p1351_p4), %s294_s22, 128  }
  0x35   : > { %1244 = vsyncadd (%p1351_p4), %s294_s22, 4294967168 }
  0x36   : > { %1246 = dma.done.wait (%p46_p1), [#allocation6], 2064  }
  0x37   : > { %1248 = vsyncadd (%p46_p1), [#allocation6], 4294965232 }
  0x38   : > { %1250 = dma.done.wait (%p46_p1), [#allocation9], 2048  }
  0x39   : > { %1252 = vsyncadd (%p46_p1), [#allocation9], 4294965248  ;;  %v1448_v0 = vld [vmem:[%s297_s2] sm:$0xff]  ;;  %v1280_v1 = vmov 128.0   ;;  %v870_v18 = vld [vmem:[#allocation7 + $0x60] sm:$0xf] }
  0x3a   : > { %397 = vadd.xlane.f32.xlu0 %v1448_v0  ;;  %1069 = vrcp.f32 %v1280_v1  ;;  %v878_v2 = vld [vmem:[#allocation7 + $0x70] sm:$0xf]  ;;  %v967_v3 = vld [vmem:[#allocation7 + $0x74] sm:$0xf0]  ;;  %v966_v4 = vld [vmem:[#allocation7 + $0x74] sm:$0xf] }
  0x3b   : > { %v879_v5 = vor.u32 %v967_v3, %v878_v2  ;;  %v880_v6 = vld [vmem:[#allocation7 + $0x78] sm:$0xf0]  ;;  %v965_v19 = vld [vmem:[#allocation7 + $0x64] sm:$0xf0]  ;;  %v964_v20 = vld [vmem:[#allocation7 + $0x64] sm:$0xf] }
  0x3c   : > { %v883_v7 = vor.u32 %v966_v4, %v880_v6  ;;  %v871_v21 = vor.u32 %v965_v19, %v870_v18  ;;  %v872_v22 = vld [vmem:[#allocation7 + $0x68] sm:$0xf0]  ;;  %v862_v24 = vld [vmem:[#allocation7 + $0x50] sm:$0xf]  ;;  %v963_v25 = vld [vmem:[#allocation7 + $0x54] sm:$0xf0] }
  0x3d   : > { %518 = vmatpush.bf16.msra.mxu0 %v879_v5  ;;  %v875_v23 = vor.u32 %v964_v20, %v872_v22  ;;  %v962_v26 = vld [vmem:[#allocation7 + $0x54] sm:$0xf]  ;;  %v863_v27 = vor.u32 %v963_v25, %v862_v24  ;;  %v864_v28 = vld [vmem:[#allocation7 + $0x58] sm:$0xf0]  ;;  %v854_v30 = vld [vmem:[#allocation7 + $0x40] sm:$0xf] }
  0x3e   : > { %531 = vmatpush.bf16.msra.mxu1 %v883_v7  ;;  %v867_v29 = vor.u32 %v962_v26, %v864_v28  ;;  %v961_v31 = vld [vmem:[#allocation7 + $0x44] sm:$0xf0]  ;;  %v960_v32 = vld [vmem:[#allocation7 + $0x44] sm:$0xf]  ;;  %v856_v34 = vld [vmem:[#allocation7 + $0x48] sm:$0xf0] }
  0x3f   : > { %v855_v33 = vor.u32 %v961_v31, %v854_v30  ;;  %v859_v35 = vor.u32 %v960_v32, %v856_v34  ;;  %v846_v36 = vld [vmem:[#allocation7 + $0x30] sm:$0xf]  ;;  %v959_v37 = vld [vmem:[#allocation7 + $0x34] sm:$0xf0]  ;;  %v958_v38 = vld [vmem:[#allocation7 + $0x34] sm:$0xf] }
  0x40   : > { %v1070_v8 = vpop.eup %1069  ;;  %v847_v39 = vor.u32 %v959_v37, %v846_v36  ;;  %v848_v40 = vld [vmem:[#allocation7 + $0x38] sm:$0xf0]  ;;  %v838_v42 = vld [vmem:[#allocation7 + $0x20] sm:$0xf]  ;;  %v957_v43 = vld [vmem:[#allocation7 + $0x24] sm:$0xf0] }
  0x41   : > { %v400_v9 = vmul.f32 128.0, %v1070_v8  ;;  %vm404_vm0 = vweird.f32 %v1070_v8  ;;  %519 = vmatpush.bf16.msra.mxu0 %v871_v21  ;;  %v851_v41 = vor.u32 %v958_v38, %v848_v40  ;;  %v956_v44 = vld [vmem:[#allocation7 + $0x24] sm:$0xf]  ;;  %v839_v45 = vor.u32 %v957_v43, %v838_v42  ;;  %v840_v46 = vld [vmem:[#allocation7 + $0x28] sm:$0xf0]  ;;  %v975_v60 = vld [vmem:[#allocation8 + $0x38] sm:$0xff] }
  0x42   : > { %532 = vmatpush.bf16.msra.mxu1 %v875_v23  ;;  %v843_v47 = vor.u32 %v956_v44, %v840_v46  ;;  %v830_v48 = vld [vmem:[#allocation7 + $0x10] sm:$0xf]  ;;  %v955_v49 = vld [vmem:[#allocation7 + $0x14] sm:$0xf0]  ;;  %v954_v50 = vld [vmem:[#allocation7 + $0x14] sm:$0xf]  ;;  %663 = vmatpush.bf16.msra.mxu2 %v975_v60 }
  0x43   : > { %v401_v10 = vsub.f32 1.0, %v400_v9  ;;  %v831_v51 = vor.u32 %v955_v49, %v830_v48  ;;  %v832_v52 = vld [vmem:[#allocation7 + $0x18] sm:$0xf0]  ;;  %v822_v53 = vld [vmem:[#allocation7] sm:$0xf]  ;;  %v973_v18 = vld [vmem:[#allocation8 + $0x28] sm:$0xff] }
  0x44   : > { %v953_v54 = vld [vmem:[#allocation7 + $0x4] sm:$0xf0]  ;;  %v835_v55 = vor.u32 %v954_v50, %v832_v52  ;;  %v952_v56 = vld [vmem:[#allocation7 + $0x4] sm:$0xf]  ;;  %v824_v57 = vld [vmem:[#allocation7 + $0x8] sm:$0xf0] }
  0x45   : > { %v402_v11 = vmul.f32 %v1070_v8, %v401_v10  ;;  %520 = vmatpush.bf16.msra.mxu0 %v863_v27  ;;  %v823_v58 = vor.u32 %v953_v54, %v822_v53  ;;  %v827_v59 = vor.u32 %v952_v56, %v824_v57  ;;  %v983_v61 = vld [vmem:[#allocation8 + $0x78] sm:$0xff]  ;;  %v981_v19 = vld [vmem:[#allocation8 + $0x68] sm:$0xff]  ;;  %v972_v20 = vld [vmem:[#allocation8 + $0x20] sm:$0xff]  ;;  %s949_s14 = sshll.u32 %s1342_s28, 3  ;;  %s343_s9 = scalar_lea.vmem [#allocation10], %s815_s11 }
  0x46   : > { %533 = vmatpush.bf16.msra.mxu1 %v867_v29  ;;  %676 = vmatpush.bf16.msra.mxu3 %v983_v61  ;;  %v980_v21 = vld [vmem:[#allocation8 + $0x60] sm:$0xff]  ;;  %v971_v22 = vld [vmem:[#allocation8 + $0x18] sm:$0xff]  ;;  %v970_v23 = vld [vmem:[#allocation8 + $0x10] sm:$0xff]  ;;  %s702_s29 = scalar_lea.hbm %s1513_s7, %s949_s14  ;;  %s704_s22 = sshll.u32 %s343_s9, 4  ;;  %s705_s22 = int_to_ptr.vmem [resolvable:$true] %s704_s22 }
  0x47   : > { %v403_v12 = vadd.f32 %v1070_v8, %v402_v11  ;;  %v1067_v11 = vld [vmem:[#allocation5] ss:$0 sm:$0xff]  ;;  %v978_v24 = vld [vmem:[#allocation8 + $0x50] sm:$0xff]  ;;  %v969_v25 = vld [vmem:[#allocation8 + $0x8] sm:$0xff]  ;;  %s706_s2 = sshll.u32 %s702_s29, 4  ;;  %s692_s28 = scalar_lea.sflag [#allocation4], %s1430_s21  ;;  %s707_s2 = int_to_ptr.hbm [resolvable:$true] %s706_s2 }
  0x48   : > { %v977_v26 = vld [vmem:[#allocation8 + $0x48] sm:$0xff]  ;;  %v968_v27 = vld [vmem:[#allocation8] sm:$0xff]  ;;  %s1211_s30 = sshra.s32 %s707_s2, 4  ;;  %s1217_s11 = scalar_lea.hbm %s1513_s7, 16  ;;  %s1212_s30 = int_to_ptr.hbm [resolvable:$true] %s1211_s30 }
  0x49   : > { %v1451_v13 = vsel %vm404_vm0, %v1070_v8, %v403_v12  ;;  %521 = vmatpush.bf16.msra.mxu0 %v855_v33  ;;  %v1066_v8 = vld [vmem:[%s1507_s1] ss:$0 sm:$0xff]  ;;  %v976_v28 = vld [vmem:[#allocation8 + $0x40] sm:$0xff]  ;;  %s1213_s12 = scalar_lea.hbm %s1212_s30, 8  ;;  %p1218_p9 = scmp.lt.s32.totalorder %s1212_s30, %s1513_s7 }
  0x4a   : > { %534 = vmatpush.bf16.msra.mxu1 %v859_v35  ;;  %v363_v29 = vld [vmem:[%s1510_s4] sm:$0x3]  ;;  %p1214_p1 = scmp.ne.s32.totalorder %s1212_s30, %s1213_s12  ;;  %p1219_p10 = scmp.lt.s32.totalorder %s1217_s11, %s1213_s12 }
  0x4b   : > { %v434_v30 = vperm.slane %v363_v29, 0  ;;  %v435_v31 = vperm.slane %v363_v29, 1 }
  0x4c   : > { %p1215_p4 = pnand %p1214_p1, %p1403_p3  ;;  %p1220_p2 = por %p1219_p10, %p1218_p9 }
  0x4d   : > { %522 = vmatpush.bf16.msra.mxu0 %v847_v39 }
  0x4e   : > { %535 = vmatpush.bf16.msra.mxu1 %v851_v41  ;;  %p1216_p8 = pneg %p1215_p4 }
  0x50   : > { %p1221_p11 = pnand %p1220_p2, %p1216_p8 }
  0x51   : > { %523 = vmatpush.bf16.msra.mxu0 %v839_v45 }
  0x52   : > { %536 = vmatpush.bf16.msra.mxu1 %v843_v47 }
  0x55   : > { %524 = vmatpush.bf16.msra.mxu0 %v831_v51 }
  0x56   : > { %537 = vmatpush.bf16.msra.mxu1 %v835_v55 }
  0x59   : > { %525 = vmatpush.bf16.msra.mxu0 %v823_v58  ;;  %v1068_v58 = vld [vmem:[%s1512_s6] ss:$0 sm:$0xff] }
  0x5a   : > { %538 = vmatpush.bf16.msra.mxu1 %v827_v59 }
  0xad   : > { %v398_v14 = vpop.xlane.xlu0 %397 }
  0xae   : > { %v406_v15 = vmul.f32 %v1451_v13, %v398_v14 }
  0xb0   : > { %v1455_v16 = vsub.f32 %v1448_v0, %v406_v15  ;;  %v974_v15 = vld [vmem:[#allocation8 + $0x30] sm:$0xff] }
  0xb1   : > { %664 = vmatpush.bf16.msra.mxu2 %v974_v15 }
  0xb2   : > { %v408_v17 = vmul.f32 %v1455_v16, %v1455_v16 }
  0xb4   : > { %409 = vadd.xlane.f32.xlu0 %v408_v17  ;;  %v982_v17 = vld [vmem:[#allocation8 + $0x70] sm:$0xff] }
  0xb5   : > { %677 = vmatpush.bf16.msra.mxu3 %v982_v17  ;;  %665 = vmatpush.bf16.msra.mxu2 %v973_v18 }
  0xb9   : > { %678 = vmatpush.bf16.msra.mxu3 %v981_v19  ;;  %666 = vmatpush.bf16.msra.mxu2 %v972_v20 }
  0xbd   : > { %679 = vmatpush.bf16.msra.mxu3 %v980_v21  ;;  %667 = vmatpush.bf16.msra.mxu2 %v971_v22 }
  0xc1   : > { %668 = vmatpush.bf16.msra.mxu2 %v970_v23 }
  0xc5   : > { %669 = vmatpush.bf16.msra.mxu2 %v969_v25 }
  0xc9   : > { %670 = vmatpush.bf16.msra.mxu2 %v968_v27 }
 0x127   : > { %v410_v62 = vpop.xlane.xlu0 %409 }
 0x128   : > { %v411_v63 = vmul.f32 %v410_v62, %v1451_v13 }
 0x12a   : > { %v412_v1 = vadd.f32 1e-05, %v411_v63 }
 0x12c   : > { %1071 = vrsqrt.f32 %v412_v1  ;;  %vm419_vm2 = vweird.f32 %v412_v1 }
 0x132   : > { %v1072_v2 = vpop.eup %1071 }
 0x133   : > { %v414_v3 = vmul.f32 %v1072_v2, %v412_v1  ;;  %vm420_vm1 = vweird.f32 %v1072_v2 }
 0x134   : > { %vm421_vm3 = vmor %vm419_vm2, %vm420_vm1 }
 0x135   : > { %v415_v4 = vmul.f32 %v1072_v2, %v414_v3 }
 0x137   : > { %v416_v5 = vmul.f32 0.5, %v415_v4 }
 0x139   : > { %v417_v6 = vsub.f32 1.5, %v416_v5 }
 0x13b   : > { %v418_v7 = vmul.f32 %v1072_v2, %v417_v6 }
 0x13d   : > { %v422_v9 = vsel %vm421_vm3, %v1072_v2, %v418_v7 }
 0x13e   : > { %v423_v10 = vmul.f32 %v422_v9, %v1455_v16  ;;  %v979_v16 = vld [vmem:[#allocation8 + $0x58] sm:$0xff] }
 0x13f   : > { %680 = vmatpush.bf16.msra.mxu3 %v979_v16 }
 0x140   : > { %v427_v12 = vmul.f32 %v1066_v8, %v423_v10 }
 0x142   : > { %v431_v13 = vadd.f32 %v1067_v11, %v427_v12 }
 0x143   : > { %681 = vmatpush.bf16.msra.mxu3 %v978_v24 }
 0x144   : > { %v432_v14 = vpack.c.bf16 %v431_v13, %v431_v13 }
 0x146   : > { %526 = vmatmul.bf16.vlgmr.msra.gmra.mxu0 %v432_v14  ;;  %539 = vmatmul.bf16.vlgmr.msra.gmra.mxu1 %v432_v14 }
 0x147   : > { %682 = vmatpush.bf16.msra.mxu3 %v977_v26 }
 0x14b   : > { %683 = vmatpush.bf16.msra.mxu3 %v976_v28 }
 0x1c3   : > { %v527_v32 = vpop.f32.mrf.mxu0  ;;  %v540_v33 = vpop.f32.mrf.mxu1 }
 0x1c4   : > { %v528_v34 = vadd.f32 %v527_v32, %v434_v30  ;;  %v541_v35 = vadd.f32 %v540_v33, %v435_v31 }
 0x1c6   : > { %v544_v36 = vmul.f32 %v528_v34, %v528_v34  ;;  %v545_v37 = vmul.f32 %v541_v35, %v541_v35 }
 0x1c8   : > { %v546_v38 = vmul.f32 %v544_v36, %v528_v34  ;;  %v547_v39 = vmul.f32 %v545_v37, %v541_v35 }
 0x1ca   : > { %v548_v40 = vmul.f32 0.044715, %v546_v38  ;;  %v549_v41 = vmul.f32 0.044715, %v547_v39 }
 0x1cb   : > { %v529_v42 = vpop.f32.mrf.mxu0  ;;  %v542_v43 = vpop.f32.mrf.mxu1 }
 0x1cc   : > { %v550_v44 = vadd.f32 %v548_v40, %v528_v34  ;;  %v551_v45 = vadd.f32 %v549_v41, %v541_v35 }
 0x1ce   : > { %v552_v46 = vmul.f32 0.7978846, %v550_v44  ;;  %v553_v47 = vmul.f32 0.7978846, %v551_v45 }
 0x1d0   : > { %1073 = vtanh.f32 %v552_v46 }
 0x1d1   : > { %1075 = vtanh.f32 %v553_v47 }
 0x1d6   : > { %v1074_v48 = vpop.eup %1073 }
 0x1d7   : > { %v1076_v49 = vpop.eup %1075  ;;  %v556_v50 = vadd.f32 1.0, %v1074_v48 }
 0x1d8   : > { %v557_v51 = vadd.f32 1.0, %v1076_v49 }
 0x1d9   : > { %v558_v52 = vmul.f32 0.5, %v556_v50 }
 0x1da   : > { %v559_v53 = vmul.f32 0.5, %v557_v51 }
 0x1db   : > { %v560_v54 = vmul.f32 %v558_v52, %v528_v34 }
 0x1dc   : > { %v561_v55 = vmul.f32 %v559_v53, %v541_v35 }
 0x1dd   : > { %v562_v56 = vpack.c.bf16 %v560_v54, %v560_v54 }
 0x1de   : > { %v563_v57 = vpack.c.bf16 %v561_v55, %v561_v55 }
 0x1df   : > { %671 = vmatmul.bf16.vlgmr.msra.gmra.mxu2 %v562_v56 }
 0x1e0   : > { %684 = vmatmul.bf16.vlgmr.msra.gmra.mxu3 %v563_v57 }
 0x262   : > { %v672_v59 = vpop.f32.mrf.mxu2 }
 0x263   : > { %v673_v60 = vadd.f32 %v1068_v58, %v672_v59  ;;  %v685_v61 = vpop.f32.mrf.mxu3 }
 0x265   : > { %v686_v62 = vadd.f32 %v685_v61, %v673_v60 }
 0x267   : > { %v689_v63 = vadd.f32 %v686_v62, %v1448_v0 }
 0x269   : > { %690 = vst [vmem:[%s343_s9] sm:$0xff] %v689_v63 }
 0x26a   : > { %v674_v1 = vpop.f32.mrf.mxu2 }
 0x26b   : > { %1224 = shalt.err (!%p1221_p11)
}
 0x26c   : > { %998 = dma.vmem_to_hbm [thread:$0]  (%p1403_p3), %s705_s22, 128, %s707_s2, %s692_s28   ;;  %v687_v0 = vpop.f32.mrf.mxu3 }
 0x26d PF: > { %s718_s21 = sand.u32 1, %s1259_s24   ;;  %p1522_p12 = scmp.ge.s32.totalorder %s1271_s27, 2 }
 0x26e   : > { %s719_s17 = scalar_lea.sflag [#allocation4], %s718_s21 }
 0x26f   : > { %p1015_p13 = pnand %p1522_p12, %p1356_p6 }
 0x271   : > { %p1016_p0 = pneg %p1015_p13 }
 0x273   : > { %1254 = dma.done.wait (%p1016_p0), %s719_s17, 128  }
 0x274   : > { %1256 = vsyncadd (%p1016_p0), %s719_s17, 4294967168  ;;  %p22_p5 = scmp.ge.s32.totalorder %s1390_s15, 4   ;;  %s1523_s24 = smov %s1263_s25 }
 0x275   : > { %s1524_s25 = smov %s1267_s26  ;;  %s1525_s26 = smov %s1399_s19 }
 0x276   : > { %s1526_s27 = smov %s1390_s15  ;;  %24 = sbr.rel (!%p22_p5) target bundleno = 9 (0x9), region = 105 }
 0x27b   :  { %725 = vsyncpa [#allocation3], 1 }
 0x27c   :  { %727 = vsyncpa [#allocation3 + $0x1], 1 }
 0x27d   :  { %728 = vsyncpa [#allocation6], 1 }
 0x27e   :  { %729 = vsyncpa [#allocation9], 1 }
 0x27f   :  { %730 = vsyncpa [#allocation4], 1 }
 0x280   :  { %732 = vsyncpa [#allocation4 + $0x1], 1 }

</bundles_post_ra>
